<compile_context>
chip_gen: v7x
topology: tpu7x:2x2x1
jax: 0.10.0
libtpu: 0.0.40
codegen_flags: <defaults>
</compile_context>

<pallas_src>
import jax
import jax.numpy as jnp
from jax.experimental import pallas as pl
from jax.experimental.pallas import tpu as pltpu
import numpy as np


def _round_up(n, m):
    return (n + m - 1) // m * m


def _rnn_head_kernel(x_ref, wih_ref, whh_ref, b_ref,
                     w1_ref, b1_ref, w2_ref, b2_ref, out_ref):
    batch, seq, input_size = x_ref.shape
    hidden_p = whh_ref.shape[0]

    # Weights arrive as bf16 (halved DMA); upcast once, compute in f32.
    x = x_ref[...]                              # (batch, seq, input) f32
    wih = wih_ref[...].astype(jnp.float32)      # (input, hidden_p)
    whh = whh_ref[...].astype(jnp.float32)      # (hidden_p, hidden_p)
    b = b_ref[...]                              # (1, hidden_p) f32

    # ---- 1) Input projection, hoisted off the serial path.  input_size is
    #         tiny (4), so use VPU broadcast multiply-adds instead of an MXU
    #         matmul against a zero-padded K; results stay in vregs.
    xproj = []
    for t in range(seq):
        proj = b
        for k in range(input_size):
            proj = proj + x[:, t, k:k + 1] * wih[k:k + 1, :]
        xproj.append(proj)                      # (batch, hidden_p)

    # ---- 2) Serial recurrence: only h @ whh is on the critical path; h lives
    #         in vregs.  Fully unrolled (seq=8).  For long sequences this
    #         should become a bounded-unroll loop over a seq-chunked grid.
    h = jnp.zeros((batch, hidden_p), jnp.float32)
    for t in range(seq):
        h = jnp.tanh(xproj[t] +
                     jnp.dot(h, whh, preferred_element_type=jnp.float32))

    # ---- 3) Head: fc -> tanh -> fc2 -> tanh -> L1 normalize (lane-dense store).
    w1 = w1_ref[...].astype(jnp.float32)
    w2 = w2_ref[...].astype(jnp.float32)
    z1 = jnp.tanh(jnp.dot(h, w1, preferred_element_type=jnp.float32) + b1_ref[...])
    z2 = jnp.tanh(jnp.dot(z1, w2, preferred_element_type=jnp.float32) + b2_ref[...])
    denom = jnp.sum(jnp.abs(z2), axis=1, keepdims=True)
    out_ref[...] = z2 * pl.reciprocal(denom, approx=True)


def prepare_params(params):
    """One-time parameter prep (hoisted out of the per-call path).

    Pads output-feature dims to 128-lane multiples (zero padding is exact for
    this network) and stores matmul weights in bf16.  Call once; reuse the
    result for every forward call.
    """
    wih, whh, b, w1, b1, w2, b2 = params
    input_size, hidden = wih.shape
    half = w1.shape[1]
    assets = w2.shape[1]
    hidden_p = _round_up(hidden, 128)
    half_p = _round_up(half, 128)
    assets_p = _round_up(assets, 128)

    def pad(a, r, c, dtype):
        out = jnp.zeros((r, c), dtype)
        return out.at[:a.shape[0], :a.shape[1]].set(a.astype(dtype))

    weights = (
        pad(wih, input_size, hidden_p, jnp.bfloat16),  # K stays unpadded (=4)
        pad(whh, hidden_p, hidden_p, jnp.bfloat16),
        pad(b, 1, hidden_p, jnp.float32),
        pad(w1, hidden_p, half_p, jnp.bfloat16),
        pad(b1, 1, half_p, jnp.float32),
        pad(w2, half_p, assets_p, jnp.bfloat16),
        pad(b2, 1, assets_p, jnp.float32),
    )
    return weights, assets


def time_series_model_forward(x, prepared):
    """x: (batch, seq, input_size) float32. Returns (batch, assets_num)."""
    weights, assets = prepared
    wih_p, whh_p, b_p, w1_p, b1_p, w2_p, b2_p = weights
    batch, seq, input_size = x.shape
    hidden_p = whh_p.shape[0]
    half_p = w1_p.shape[1]
    assets_p = w2_p.shape[1]

    const2 = lambda i: (0, 0)

    flops = (2 * seq * batch * input_size * hidden_p
             + 2 * seq * batch * hidden_p * hidden_p
             + 2 * batch * hidden_p * half_p
             + 2 * batch * half_p * assets_p)
    transcendentals = seq * batch * hidden_p + batch * (half_p + assets_p)
    bytes_accessed = (x.size * 4
                      + sum(int(w.size) * w.dtype.itemsize for w in weights)
                      + batch * assets_p * 4)

    out_p = pl.pallas_call(
        _rnn_head_kernel,
        out_shape=jax.ShapeDtypeStruct((batch, assets_p), jnp.float32),
        grid_spec=pltpu.PrefetchScalarGridSpec(
            num_scalar_prefetch=0,
            grid=(1,),
            in_specs=[
                # x as a full-array block (block == full dims, so the (8,128)
                # divisibility rule does not apply); no host-side inflation.
                pl.BlockSpec((batch, seq, input_size), lambda i: (0, 0, 0)),
                pl.BlockSpec((input_size, hidden_p), const2),
                pl.BlockSpec((hidden_p, hidden_p), const2),
                pl.BlockSpec((1, hidden_p), const2),
                pl.BlockSpec((hidden_p, half_p), const2),
                pl.BlockSpec((1, half_p), const2),
                pl.BlockSpec((half_p, assets_p), const2),
                pl.BlockSpec((1, assets_p), const2),
            ],
            out_specs=pl.BlockSpec((batch, assets_p), const2),
        ),
        compiler_params=pltpu.CompilerParams(
            dimension_semantics=("arbitrary",)),
        cost_estimate=pl.CostEstimate(flops=flops,
                                      transcendentals=transcendentals,
                                      bytes_accessed=bytes_accessed),
    )(x.astype(jnp.float32), *weights)

    # Only the lane padding needs removing (store inside the kernel is
    # lane-dense at 128 lanes).
    return out_p[:, :assets]


def _reference_forward(x, params):
    """Pure-JAX reference of the same forward pass.

    Mirrors the bf16 weight storage used by prepare_params (a deliberate
    perf choice) so the comparison isolates kernel correctness; biases and
    all arithmetic stay f32.
    """
    wih, whh, b, w1, b1, w2, b2 = params
    q = lambda w: w.astype(jnp.bfloat16).astype(jnp.float32)
    wih, whh, w1, w2 = q(wih), q(whh), q(w1), q(w2)
    batch, seq, _ = x.shape
    h = jnp.zeros((batch, whh.shape[0]), jnp.float32)
    for t in range(seq):
        h = jnp.tanh(x[:, t, :] @ wih + h @ whh + b)
    z1 = jnp.tanh(h @ w1 + b1)
    z2 = jnp.tanh(z1 @ w2 + b2)
    return z2 / jnp.sum(jnp.abs(z2), axis=1, keepdims=True)


def init_params(key, input_size, hidden, assets):
    """Deterministic synthetic parameters (shapes match nn.RNN + two nn.Linear)."""
    ks = jax.random.split(key, 7)
    s = 0.1
    # nn.RNN: weight_ih_l0 (hidden, input), weight_hh_l0 (hidden, hidden),
    #         bias_ih_l0 + bias_hh_l0 folded into a single bias row;
    #         all stored transposed to (in_features, out_features).
    wih = s * jax.random.normal(ks[0], (input_size, hidden), jnp.float32)
    whh = s * jax.random.normal(ks[1], (hidden, hidden), jnp.float32)
    b = s * jax.random.normal(ks[2], (1, hidden), jnp.float32)
    # fc: hidden -> hidden//2 ; fc2: hidden//2 -> assets
    w1 = s * jax.random.normal(ks[3], (hidden, hidden // 2), jnp.float32)
    b1 = s * jax.random.normal(ks[4], (1, hidden // 2), jnp.float32)
    w2 = s * jax.random.normal(ks[5], (hidden // 2, assets), jnp.float32)
    b2 = s * jax.random.normal(ks[6], (1, assets), jnp.float32)
    return (wih, whh, b, w1, b1, w2, b2)


if __name__ == "__main__":
    batch, seq, input_size = 2, 8, 4      # input_size = sum of feature columns
    hidden, assets_num = 32, 4

    key = jax.random.PRNGKey(0)
    kx, kp = jax.random.split(key)
    x = jax.random.normal(kx, (batch, seq, input_size), jnp.float32)
    params = init_params(kp, input_size, hidden, assets_num)

    prepared = prepare_params(params)     # one-time: pad + bf16-cast weights

    out = time_series_model_forward(x, prepared)
    out = jax.block_until_ready(out)

    ref = _reference_forward(x, params)
    np.testing.assert_allclose(np.asarray(out), np.asarray(ref),
                               rtol=2e-3, atol=2e-3)
    assert out.shape == (batch, assets_num)
    print("KERNEL_OK")
</pallas_src>

<mosaic_0001>
module attributes {stable_mosaic.version = 11 : i64} {
  func.func @_rnn_head_kernel(%arg0: i32, %arg1: memref<2x8x4xf32, #tpu.memory_space<vmem>>, %arg2: memref<4x128xbf16, #tpu.memory_space<vmem>>, %arg3: memref<128x128xbf16, #tpu.memory_space<vmem>>, %arg4: memref<1x128xf32, #tpu.memory_space<vmem>>, %arg5: memref<128x128xbf16, #tpu.memory_space<vmem>>, %arg6: memref<1x128xf32, #tpu.memory_space<vmem>>, %arg7: memref<128x128xbf16, #tpu.memory_space<vmem>>, %arg8: memref<1x128xf32, #tpu.memory_space<vmem>>, %arg9: memref<2x128xf32, #tpu.memory_space<vmem>>) attributes {dimension_semantics = [#tpu.dimension_semantics<arbitrary>], iteration_bounds = array<i64: 1>, scalar_prefetch = 0 : i64, scratch_operands = 0 : i64, tpu.core_type = #tpu.core_type<tc>, window_params = [{pipeline_mode = #tpu.pipeline_mode<synchronous>, transform_indices = @transform_0, window_bounds = array<i64: 2, 8, 4>}, {pipeline_mode = #tpu.pipeline_mode<synchronous>, transform_indices = @transform_1, window_bounds = array<i64: 4, 128>}, {pipeline_mode = #tpu.pipeline_mode<synchronous>, transform_indices = @transform_2, window_bounds = array<i64: 128, 128>}, {pipeline_mode = #tpu.pipeline_mode<synchronous>, transform_indices = @transform_3, window_bounds = array<i64: 1, 128>}, {pipeline_mode = #tpu.pipeline_mode<synchronous>, transform_indices = @transform_4, window_bounds = array<i64: 128, 128>}, {pipeline_mode = #tpu.pipeline_mode<synchronous>, transform_indices = @transform_5, window_bounds = array<i64: 1, 128>}, {pipeline_mode = #tpu.pipeline_mode<synchronous>, transform_indices = @transform_6, window_bounds = array<i64: 128, 128>}, {pipeline_mode = #tpu.pipeline_mode<synchronous>, transform_indices = @transform_7, window_bounds = array<i64: 1, 128>}, {pipeline_mode = #tpu.pipeline_mode<synchronous>, transform_indices = @transform_8, window_bounds = array<i64: 2, 128>}]} {
    %c0 = arith.constant 0 : index
    %c0_0 = arith.constant 0 : index
    %c0_1 = arith.constant 0 : index
    %0 = vector.load %arg1[%c0, %c0_0, %c0_1] : memref<2x8x4xf32, #tpu.memory_space<vmem>>, vector<2x8x4xf32>
    %c0_2 = arith.constant 0 : index
    %c0_3 = arith.constant 0 : index
    %1 = vector.load %arg2[%c0_2, %c0_3] : memref<4x128xbf16, #tpu.memory_space<vmem>>, vector<4x128xbf16>
    %2 = arith.extf %1 : vector<4x128xbf16> to vector<4x128xf32>
    %c0_4 = arith.constant 0 : index
    %c0_5 = arith.constant 0 : index
    %3 = vector.load %arg3[%c0_4, %c0_5] : memref<128x128xbf16, #tpu.memory_space<vmem>>, vector<128x128xbf16>
    %4 = arith.extf %3 : vector<128x128xbf16> to vector<128x128xf32>
    %c0_6 = arith.constant 0 : index
    %c0_7 = arith.constant 0 : index
    %5 = vector.load %arg4[%c0_6, %c0_7] : memref<1x128xf32, #tpu.memory_space<vmem>>, vector<1x128xf32>
    %6 = vector.extract_strided_slice %0 {offsets = [0, 0, 0], sizes = [2, 1, 1], strides = [1, 1, 1]} : vector<2x8x4xf32> to vector<2x1x1xf32>
    %7 = vector.shape_cast %6 : vector<2x1x1xf32> to vector<2x1xf32>
    %8 = vector.extract_strided_slice %2 {offsets = [0, 0], sizes = [1, 128], strides = [1, 1]} : vector<4x128xf32> to vector<1x128xf32>
    %9 = vector.broadcast %7 : vector<2x1xf32> to vector<2x128xf32>
    %10 = vector.broadcast %8 : vector<1x128xf32> to vector<2x128xf32>
    %11 = arith.mulf %9, %10 : vector<2x128xf32>
    %12 = vector.broadcast %5 : vector<1x128xf32> to vector<2x128xf32>
    %13 = arith.addf %12, %11 : vector<2x128xf32>
    %14 = vector.extract_strided_slice %0 {offsets = [0, 0, 1], sizes = [2, 1, 1], strides = [1, 1, 1]} : vector<2x8x4xf32> to vector<2x1x1xf32>
    %15 = vector.shape_cast %14 : vector<2x1x1xf32> to vector<2x1xf32>
    %16 = vector.extract_strided_slice %2 {offsets = [1, 0], sizes = [1, 128], strides = [1, 1]} : vector<4x128xf32> to vector<1x128xf32>
    %17 = vector.broadcast %15 : vector<2x1xf32> to vector<2x128xf32>
    %18 = vector.broadcast %16 : vector<1x128xf32> to vector<2x128xf32>
    %19 = arith.mulf %17, %18 : vector<2x128xf32>
    %20 = arith.addf %13, %19 : vector<2x128xf32>
    %21 = vector.extract_strided_slice %0 {offsets = [0, 0, 2], sizes = [2, 1, 1], strides = [1, 1, 1]} : vector<2x8x4xf32> to vector<2x1x1xf32>
    %22 = vector.shape_cast %21 : vector<2x1x1xf32> to vector<2x1xf32>
    %23 = vector.extract_strided_slice %2 {offsets = [2, 0], sizes = [1, 128], strides = [1, 1]} : vector<4x128xf32> to vector<1x128xf32>
    %24 = vector.broadcast %22 : vector<2x1xf32> to vector<2x128xf32>
    %25 = vector.broadcast %23 : vector<1x128xf32> to vector<2x128xf32>
    %26 = arith.mulf %24, %25 : vector<2x128xf32>
    %27 = arith.addf %20, %26 : vector<2x128xf32>
    %28 = vector.extract_strided_slice %0 {offsets = [0, 0, 3], sizes = [2, 1, 1], strides = [1, 1, 1]} : vector<2x8x4xf32> to vector<2x1x1xf32>
    %29 = vector.shape_cast %28 : vector<2x1x1xf32> to vector<2x1xf32>
    %30 = vector.extract_strided_slice %2 {offsets = [3, 0], sizes = [1, 128], strides = [1, 1]} : vector<4x128xf32> to vector<1x128xf32>
    %31 = vector.broadcast %29 : vector<2x1xf32> to vector<2x128xf32>
    %32 = vector.broadcast %30 : vector<1x128xf32> to vector<2x128xf32>
    %33 = arith.mulf %31, %32 : vector<2x128xf32>
    %34 = arith.addf %27, %33 : vector<2x128xf32>
    %35 = vector.extract_strided_slice %0 {offsets = [0, 1, 0], sizes = [2, 1, 1], strides = [1, 1, 1]} : vector<2x8x4xf32> to vector<2x1x1xf32>
    %36 = vector.shape_cast %35 : vector<2x1x1xf32> to vector<2x1xf32>
    %37 = vector.extract_strided_slice %2 {offsets = [0, 0], sizes = [1, 128], strides = [1, 1]} : vector<4x128xf32> to vector<1x128xf32>
    %38 = vector.broadcast %36 : vector<2x1xf32> to vector<2x128xf32>
    %39 = vector.broadcast %37 : vector<1x128xf32> to vector<2x128xf32>
    %40 = arith.mulf %38, %39 : vector<2x128xf32>
    %41 = vector.broadcast %5 : vector<1x128xf32> to vector<2x128xf32>
    %42 = arith.addf %41, %40 : vector<2x128xf32>
    %43 = vector.extract_strided_slice %0 {offsets = [0, 1, 1], sizes = [2, 1, 1], strides = [1, 1, 1]} : vector<2x8x4xf32> to vector<2x1x1xf32>
    %44 = vector.shape_cast %43 : vector<2x1x1xf32> to vector<2x1xf32>
    %45 = vector.extract_strided_slice %2 {offsets = [1, 0], sizes = [1, 128], strides = [1, 1]} : vector<4x128xf32> to vector<1x128xf32>
    %46 = vector.broadcast %44 : vector<2x1xf32> to vector<2x128xf32>
    %47 = vector.broadcast %45 : vector<1x128xf32> to vector<2x128xf32>
    %48 = arith.mulf %46, %47 : vector<2x128xf32>
    %49 = arith.addf %42, %48 : vector<2x128xf32>
    %50 = vector.extract_strided_slice %0 {offsets = [0, 1, 2], sizes = [2, 1, 1], strides = [1, 1, 1]} : vector<2x8x4xf32> to vector<2x1x1xf32>
    %51 = vector.shape_cast %50 : vector<2x1x1xf32> to vector<2x1xf32>
    %52 = vector.extract_strided_slice %2 {offsets = [2, 0], sizes = [1, 128], strides = [1, 1]} : vector<4x128xf32> to vector<1x128xf32>
    %53 = vector.broadcast %51 : vector<2x1xf32> to vector<2x128xf32>
    %54 = vector.broadcast %52 : vector<1x128xf32> to vector<2x128xf32>
    %55 = arith.mulf %53, %54 : vector<2x128xf32>
    %56 = arith.addf %49, %55 : vector<2x128xf32>
    %57 = vector.extract_strided_slice %0 {offsets = [0, 1, 3], sizes = [2, 1, 1], strides = [1, 1, 1]} : vector<2x8x4xf32> to vector<2x1x1xf32>
    %58 = vector.shape_cast %57 : vector<2x1x1xf32> to vector<2x1xf32>
    %59 = vector.extract_strided_slice %2 {offsets = [3, 0], sizes = [1, 128], strides = [1, 1]} : vector<4x128xf32> to vector<1x128xf32>
    %60 = vector.broadcast %58 : vector<2x1xf32> to vector<2x128xf32>
    %61 = vector.broadcast %59 : vector<1x128xf32> to vector<2x128xf32>
    %62 = arith.mulf %60, %61 : vector<2x128xf32>
    %63 = arith.addf %56, %62 : vector<2x128xf32>
    %64 = vector.extract_strided_slice %0 {offsets = [0, 2, 0], sizes = [2, 1, 1], strides = [1, 1, 1]} : vector<2x8x4xf32> to vector<2x1x1xf32>
    %65 = vector.shape_cast %64 : vector<2x1x1xf32> to vector<2x1xf32>
    %66 = vector.extract_strided_slice %2 {offsets = [0, 0], sizes = [1, 128], strides = [1, 1]} : vector<4x128xf32> to vector<1x128xf32>
    %67 = vector.broadcast %65 : vector<2x1xf32> to vector<2x128xf32>
    %68 = vector.broadcast %66 : vector<1x128xf32> to vector<2x128xf32>
    %69 = arith.mulf %67, %68 : vector<2x128xf32>
    %70 = vector.broadcast %5 : vector<1x128xf32> to vector<2x128xf32>
    %71 = arith.addf %70, %69 : vector<2x128xf32>
    %72 = vector.extract_strided_slice %0 {offsets = [0, 2, 1], sizes = [2, 1, 1], strides = [1, 1, 1]} : vector<2x8x4xf32> to vector<2x1x1xf32>
    %73 = vector.shape_cast %72 : vector<2x1x1xf32> to vector<2x1xf32>
    %74 = vector.extract_strided_slice %2 {offsets = [1, 0], sizes = [1, 128], strides = [1, 1]} : vector<4x128xf32> to vector<1x128xf32>
    %75 = vector.broadcast %73 : vector<2x1xf32> to vector<2x128xf32>
    %76 = vector.broadcast %74 : vector<1x128xf32> to vector<2x128xf32>
    %77 = arith.mulf %75, %76 : vector<2x128xf32>
    %78 = arith.addf %71, %77 : vector<2x128xf32>
    %79 = vector.extract_strided_slice %0 {offsets = [0, 2, 2], sizes = [2, 1, 1], strides = [1, 1, 1]} : vector<2x8x4xf32> to vector<2x1x1xf32>
    %80 = vector.shape_cast %79 : vector<2x1x1xf32> to vector<2x1xf32>
    %81 = vector.extract_strided_slice %2 {offsets = [2, 0], sizes = [1, 128], strides = [1, 1]} : vector<4x128xf32> to vector<1x128xf32>
    %82 = vector.broadcast %80 : vector<2x1xf32> to vector<2x128xf32>
    %83 = vector.broadcast %81 : vector<1x128xf32> to vector<2x128xf32>
    %84 = arith.mulf %82, %83 : vector<2x128xf32>
    %85 = arith.addf %78, %84 : vector<2x128xf32>
    %86 = vector.extract_strided_slice %0 {offsets = [0, 2, 3], sizes = [2, 1, 1], strides = [1, 1, 1]} : vector<2x8x4xf32> to vector<2x1x1xf32>
    %87 = vector.shape_cast %86 : vector<2x1x1xf32> to vector<2x1xf32>
    %88 = vector.extract_strided_slice %2 {offsets = [3, 0], sizes = [1, 128], strides = [1, 1]} : vector<4x128xf32> to vector<1x128xf32>
    %89 = vector.broadcast %87 : vector<2x1xf32> to vector<2x128xf32>
    %90 = vector.broadcast %88 : vector<1x128xf32> to vector<2x128xf32>
    %91 = arith.mulf %89, %90 : vector<2x128xf32>
    %92 = arith.addf %85, %91 : vector<2x128xf32>
    %93 = vector.extract_strided_slice %0 {offsets = [0, 3, 0], sizes = [2, 1, 1], strides = [1, 1, 1]} : vector<2x8x4xf32> to vector<2x1x1xf32>
    %94 = vector.shape_cast %93 : vector<2x1x1xf32> to vector<2x1xf32>
    %95 = vector.extract_strided_slice %2 {offsets = [0, 0], sizes = [1, 128], strides = [1, 1]} : vector<4x128xf32> to vector<1x128xf32>
    %96 = vector.broadcast %94 : vector<2x1xf32> to vector<2x128xf32>
    %97 = vector.broadcast %95 : vector<1x128xf32> to vector<2x128xf32>
    %98 = arith.mulf %96, %97 : vector<2x128xf32>
    %99 = vector.broadcast %5 : vector<1x128xf32> to vector<2x128xf32>
    %100 = arith.addf %99, %98 : vector<2x128xf32>
    %101 = vector.extract_strided_slice %0 {offsets = [0, 3, 1], sizes = [2, 1, 1], strides = [1, 1, 1]} : vector<2x8x4xf32> to vector<2x1x1xf32>
    %102 = vector.shape_cast %101 : vector<2x1x1xf32> to vector<2x1xf32>
    %103 = vector.extract_strided_slice %2 {offsets = [1, 0], sizes = [1, 128], strides = [1, 1]} : vector<4x128xf32> to vector<1x128xf32>
    %104 = vector.broadcast %102 : vector<2x1xf32> to vector<2x128xf32>
    %105 = vector.broadcast %103 : vector<1x128xf32> to vector<2x128xf32>
    %106 = arith.mulf %104, %105 : vector<2x128xf32>
    %107 = arith.addf %100, %106 : vector<2x128xf32>
    %108 = vector.extract_strided_slice %0 {offsets = [0, 3, 2], sizes = [2, 1, 1], strides = [1, 1, 1]} : vector<2x8x4xf32> to vector<2x1x1xf32>
    %109 = vector.shape_cast %108 : vector<2x1x1xf32> to vector<2x1xf32>
    %110 = vector.extract_strided_slice %2 {offsets = [2, 0], sizes = [1, 128], strides = [1, 1]} : vector<4x128xf32> to vector<1x128xf32>
    %111 = vector.broadcast %109 : vector<2x1xf32> to vector<2x128xf32>
    %112 = vector.broadcast %110 : vector<1x128xf32> to vector<2x128xf32>
    %113 = arith.mulf %111, %112 : vector<2x128xf32>
    %114 = arith.addf %107, %113 : vector<2x128xf32>
    %115 = vector.extract_strided_slice %0 {offsets = [0, 3, 3], sizes = [2, 1, 1], strides = [1, 1, 1]} : vector<2x8x4xf32> to vector<2x1x1xf32>
    %116 = vector.shape_cast %115 : vector<2x1x1xf32> to vector<2x1xf32>
    %117 = vector.extract_strided_slice %2 {offsets = [3, 0], sizes = [1, 128], strides = [1, 1]} : vector<4x128xf32> to vector<1x128xf32>
    %118 = vector.broadcast %116 : vector<2x1xf32> to vector<2x128xf32>
    %119 = vector.broadcast %117 : vector<1x128xf32> to vector<2x128xf32>
    %120 = arith.mulf %118, %119 : vector<2x128xf32>
    %121 = arith.addf %114, %120 : vector<2x128xf32>
    %122 = vector.extract_strided_slice %0 {offsets = [0, 4, 0], sizes = [2, 1, 1], strides = [1, 1, 1]} : vector<2x8x4xf32> to vector<2x1x1xf32>
    %123 = vector.shape_cast %122 : vector<2x1x1xf32> to vector<2x1xf32>
    %124 = vector.extract_strided_slice %2 {offsets = [0, 0], sizes = [1, 128], strides = [1, 1]} : vector<4x128xf32> to vector<1x128xf32>
    %125 = vector.broadcast %123 : vector<2x1xf32> to vector<2x128xf32>
    %126 = vector.broadcast %124 : vector<1x128xf32> to vector<2x128xf32>
    %127 = arith.mulf %125, %126 : vector<2x128xf32>
    %128 = vector.broadcast %5 : vector<1x128xf32> to vector<2x128xf32>
    %129 = arith.addf %128, %127 : vector<2x128xf32>
    %130 = vector.extract_strided_slice %0 {offsets = [0, 4, 1], sizes = [2, 1, 1], strides = [1, 1, 1]} : vector<2x8x4xf32> to vector<2x1x1xf32>
    %131 = vector.shape_cast %130 : vector<2x1x1xf32> to vector<2x1xf32>
    %132 = vector.extract_strided_slice %2 {offsets = [1, 0], sizes = [1, 128], strides = [1, 1]} : vector<4x128xf32> to vector<1x128xf32>
    %133 = vector.broadcast %131 : vector<2x1xf32> to vector<2x128xf32>
    %134 = vector.broadcast %132 : vector<1x128xf32> to vector<2x128xf32>
    %135 = arith.mulf %133, %134 : vector<2x128xf32>
    %136 = arith.addf %129, %135 : vector<2x128xf32>
    %137 = vector.extract_strided_slice %0 {offsets = [0, 4, 2], sizes = [2, 1, 1], strides = [1, 1, 1]} : vector<2x8x4xf32> to vector<2x1x1xf32>
    %138 = vector.shape_cast %137 : vector<2x1x1xf32> to vector<2x1xf32>
    %139 = vector.extract_strided_slice %2 {offsets = [2, 0], sizes = [1, 128], strides = [1, 1]} : vector<4x128xf32> to vector<1x128xf32>
    %140 = vector.broadcast %138 : vector<2x1xf32> to vector<2x128xf32>
    %141 = vector.broadcast %139 : vector<1x128xf32> to vector<2x128xf32>
    %142 = arith.mulf %140, %141 : vector<2x128xf32>
    %143 = arith.addf %136, %142 : vector<2x128xf32>
    %144 = vector.extract_strided_slice %0 {offsets = [0, 4, 3], sizes = [2, 1, 1], strides = [1, 1, 1]} : vector<2x8x4xf32> to vector<2x1x1xf32>
    %145 = vector.shape_cast %144 : vector<2x1x1xf32> to vector<2x1xf32>
    %146 = vector.extract_strided_slice %2 {offsets = [3, 0], sizes = [1, 128], strides = [1, 1]} : vector<4x128xf32> to vector<1x128xf32>
    %147 = vector.broadcast %145 : vector<2x1xf32> to vector<2x128xf32>
    %148 = vector.broadcast %146 : vector<1x128xf32> to vector<2x128xf32>
    %149 = arith.mulf %147, %148 : vector<2x128xf32>
    %150 = arith.addf %143, %149 : vector<2x128xf32>
    %151 = vector.extract_strided_slice %0 {offsets = [0, 5, 0], sizes = [2, 1, 1], strides = [1, 1, 1]} : vector<2x8x4xf32> to vector<2x1x1xf32>
    %152 = vector.shape_cast %151 : vector<2x1x1xf32> to vector<2x1xf32>
    %153 = vector.extract_strided_slice %2 {offsets = [0, 0], sizes = [1, 128], strides = [1, 1]} : vector<4x128xf32> to vector<1x128xf32>
    %154 = vector.broadcast %152 : vector<2x1xf32> to vector<2x128xf32>
    %155 = vector.broadcast %153 : vector<1x128xf32> to vector<2x128xf32>
    %156 = arith.mulf %154, %155 : vector<2x128xf32>
    %157 = vector.broadcast %5 : vector<1x128xf32> to vector<2x128xf32>
    %158 = arith.addf %157, %156 : vector<2x128xf32>
    %159 = vector.extract_strided_slice %0 {offsets = [0, 5, 1], sizes = [2, 1, 1], strides = [1, 1, 1]} : vector<2x8x4xf32> to vector<2x1x1xf32>
    %160 = vector.shape_cast %159 : vector<2x1x1xf32> to vector<2x1xf32>
    %161 = vector.extract_strided_slice %2 {offsets = [1, 0], sizes = [1, 128], strides = [1, 1]} : vector<4x128xf32> to vector<1x128xf32>
    %162 = vector.broadcast %160 : vector<2x1xf32> to vector<2x128xf32>
    %163 = vector.broadcast %161 : vector<1x128xf32> to vector<2x128xf32>
    %164 = arith.mulf %162, %163 : vector<2x128xf32>
    %165 = arith.addf %158, %164 : vector<2x128xf32>
    %166 = vector.extract_strided_slice %0 {offsets = [0, 5, 2], sizes = [2, 1, 1], strides = [1, 1, 1]} : vector<2x8x4xf32> to vector<2x1x1xf32>
    %167 = vector.shape_cast %166 : vector<2x1x1xf32> to vector<2x1xf32>
    %168 = vector.extract_strided_slice %2 {offsets = [2, 0], sizes = [1, 128], strides = [1, 1]} : vector<4x128xf32> to vector<1x128xf32>
    %169 = vector.broadcast %167 : vector<2x1xf32> to vector<2x128xf32>
    %170 = vector.broadcast %168 : vector<1x128xf32> to vector<2x128xf32>
    %171 = arith.mulf %169, %170 : vector<2x128xf32>
    %172 = arith.addf %165, %171 : vector<2x128xf32>
    %173 = vector.extract_strided_slice %0 {offsets = [0, 5, 3], sizes = [2, 1, 1], strides = [1, 1, 1]} : vector<2x8x4xf32> to vector<2x1x1xf32>
    %174 = vector.shape_cast %173 : vector<2x1x1xf32> to vector<2x1xf32>
    %175 = vector.extract_strided_slice %2 {offsets = [3, 0], sizes = [1, 128], strides = [1, 1]} : vector<4x128xf32> to vector<1x128xf32>
    %176 = vector.broadcast %174 : vector<2x1xf32> to vector<2x128xf32>
    %177 = vector.broadcast %175 : vector<1x128xf32> to vector<2x128xf32>
    %178 = arith.mulf %176, %177 : vector<2x128xf32>
    %179 = arith.addf %172, %178 : vector<2x128xf32>
    %180 = vector.extract_strided_slice %0 {offsets = [0, 6, 0], sizes = [2, 1, 1], strides = [1, 1, 1]} : vector<2x8x4xf32> to vector<2x1x1xf32>
    %181 = vector.shape_cast %180 : vector<2x1x1xf32> to vector<2x1xf32>
    %182 = vector.extract_strided_slice %2 {offsets = [0, 0], sizes = [1, 128], strides = [1, 1]} : vector<4x128xf32> to vector<1x128xf32>
    %183 = vector.broadcast %181 : vector<2x1xf32> to vector<2x128xf32>
    %184 = vector.broadcast %182 : vector<1x128xf32> to vector<2x128xf32>
    %185 = arith.mulf %183, %184 : vector<2x128xf32>
    %186 = vector.broadcast %5 : vector<1x128xf32> to vector<2x128xf32>
    %187 = arith.addf %186, %185 : vector<2x128xf32>
    %188 = vector.extract_strided_slice %0 {offsets = [0, 6, 1], sizes = [2, 1, 1], strides = [1, 1, 1]} : vector<2x8x4xf32> to vector<2x1x1xf32>
    %189 = vector.shape_cast %188 : vector<2x1x1xf32> to vector<2x1xf32>
    %190 = vector.extract_strided_slice %2 {offsets = [1, 0], sizes = [1, 128], strides = [1, 1]} : vector<4x128xf32> to vector<1x128xf32>
    %191 = vector.broadcast %189 : vector<2x1xf32> to vector<2x128xf32>
    %192 = vector.broadcast %190 : vector<1x128xf32> to vector<2x128xf32>
    %193 = arith.mulf %191, %192 : vector<2x128xf32>
    %194 = arith.addf %187, %193 : vector<2x128xf32>
    %195 = vector.extract_strided_slice %0 {offsets = [0, 6, 2], sizes = [2, 1, 1], strides = [1, 1, 1]} : vector<2x8x4xf32> to vector<2x1x1xf32>
    %196 = vector.shape_cast %195 : vector<2x1x1xf32> to vector<2x1xf32>
    %197 = vector.extract_strided_slice %2 {offsets = [2, 0], sizes = [1, 128], strides = [1, 1]} : vector<4x128xf32> to vector<1x128xf32>
    %198 = vector.broadcast %196 : vector<2x1xf32> to vector<2x128xf32>
    %199 = vector.broadcast %197 : vector<1x128xf32> to vector<2x128xf32>
    %200 = arith.mulf %198, %199 : vector<2x128xf32>
    %201 = arith.addf %194, %200 : vector<2x128xf32>
    %202 = vector.extract_strided_slice %0 {offsets = [0, 6, 3], sizes = [2, 1, 1], strides = [1, 1, 1]} : vector<2x8x4xf32> to vector<2x1x1xf32>
    %203 = vector.shape_cast %202 : vector<2x1x1xf32> to vector<2x1xf32>
    %204 = vector.extract_strided_slice %2 {offsets = [3, 0], sizes = [1, 128], strides = [1, 1]} : vector<4x128xf32> to vector<1x128xf32>
    %205 = vector.broadcast %203 : vector<2x1xf32> to vector<2x128xf32>
    %206 = vector.broadcast %204 : vector<1x128xf32> to vector<2x128xf32>
    %207 = arith.mulf %205, %206 : vector<2x128xf32>
    %208 = arith.addf %201, %207 : vector<2x128xf32>
    %209 = vector.extract_strided_slice %0 {offsets = [0, 7, 0], sizes = [2, 1, 1], strides = [1, 1, 1]} : vector<2x8x4xf32> to vector<2x1x1xf32>
    %210 = vector.shape_cast %209 : vector<2x1x1xf32> to vector<2x1xf32>
    %211 = vector.extract_strided_slice %2 {offsets = [0, 0], sizes = [1, 128], strides = [1, 1]} : vector<4x128xf32> to vector<1x128xf32>
    %212 = vector.broadcast %210 : vector<2x1xf32> to vector<2x128xf32>
    %213 = vector.broadcast %211 : vector<1x128xf32> to vector<2x128xf32>
    %214 = arith.mulf %212, %213 : vector<2x128xf32>
    %215 = vector.broadcast %5 : vector<1x128xf32> to vector<2x128xf32>
    %216 = arith.addf %215, %214 : vector<2x128xf32>
    %217 = vector.extract_strided_slice %0 {offsets = [0, 7, 1], sizes = [2, 1, 1], strides = [1, 1, 1]} : vector<2x8x4xf32> to vector<2x1x1xf32>
    %218 = vector.shape_cast %217 : vector<2x1x1xf32> to vector<2x1xf32>
    %219 = vector.extract_strided_slice %2 {offsets = [1, 0], sizes = [1, 128], strides = [1, 1]} : vector<4x128xf32> to vector<1x128xf32>
    %220 = vector.broadcast %218 : vector<2x1xf32> to vector<2x128xf32>
    %221 = vector.broadcast %219 : vector<1x128xf32> to vector<2x128xf32>
    %222 = arith.mulf %220, %221 : vector<2x128xf32>
    %223 = arith.addf %216, %222 : vector<2x128xf32>
    %224 = vector.extract_strided_slice %0 {offsets = [0, 7, 2], sizes = [2, 1, 1], strides = [1, 1, 1]} : vector<2x8x4xf32> to vector<2x1x1xf32>
    %225 = vector.shape_cast %224 : vector<2x1x1xf32> to vector<2x1xf32>
    %226 = vector.extract_strided_slice %2 {offsets = [2, 0], sizes = [1, 128], strides = [1, 1]} : vector<4x128xf32> to vector<1x128xf32>
    %227 = vector.broadcast %225 : vector<2x1xf32> to vector<2x128xf32>
    %228 = vector.broadcast %226 : vector<1x128xf32> to vector<2x128xf32>
    %229 = arith.mulf %227, %228 : vector<2x128xf32>
    %230 = arith.addf %223, %229 : vector<2x128xf32>
    %231 = vector.extract_strided_slice %0 {offsets = [0, 7, 3], sizes = [2, 1, 1], strides = [1, 1, 1]} : vector<2x8x4xf32> to vector<2x1x1xf32>
    %232 = vector.shape_cast %231 : vector<2x1x1xf32> to vector<2x1xf32>
    %233 = vector.extract_strided_slice %2 {offsets = [3, 0], sizes = [1, 128], strides = [1, 1]} : vector<4x128xf32> to vector<1x128xf32>
    %234 = vector.broadcast %232 : vector<2x1xf32> to vector<2x128xf32>
    %235 = vector.broadcast %233 : vector<1x128xf32> to vector<2x128xf32>
    %236 = arith.mulf %234, %235 : vector<2x128xf32>
    %237 = arith.addf %230, %236 : vector<2x128xf32>
    %cst = arith.constant 0.000000e+00 : f32
    %238 = vector.broadcast %cst : f32 to vector<2x128xf32>
    %cst_8 = arith.constant dense<0.000000e+00> : vector<2x128xf32>
    %239 = tpu.matmul %238, %4, %cst_8 {dimension_numbers = #tpu.dot_dimension_numbers<[1], [0], [0], [1], [0, 0, 1, 1], [], []>} : vector<2x128xf32>, vector<128x128xf32>, vector<2x128xf32> -> vector<2x128xf32>
    %240 = arith.addf %34, %239 : vector<2x128xf32>
    %241 = math.tanh %240 : vector<2x128xf32>
    %cst_9 = arith.constant dense<0.000000e+00> : vector<2x128xf32>
    %242 = tpu.matmul %241, %4, %cst_9 {dimension_numbers = #tpu.dot_dimension_numbers<[1], [0], [0], [1], [0, 0, 1, 1], [], []>} : vector<2x128xf32>, vector<128x128xf32>, vector<2x128xf32> -> vector<2x128xf32>
    %243 = arith.addf %63, %242 : vector<2x128xf32>
    %244 = math.tanh %243 : vector<2x128xf32>
    %cst_10 = arith.constant dense<0.000000e+00> : vector<2x128xf32>
    %245 = tpu.matmul %244, %4, %cst_10 {dimension_numbers = #tpu.dot_dimension_numbers<[1], [0], [0], [1], [0, 0, 1, 1], [], []>} : vector<2x128xf32>, vector<128x128xf32>, vector<2x128xf32> -> vector<2x128xf32>
    %246 = arith.addf %92, %245 : vector<2x128xf32>
    %247 = math.tanh %246 : vector<2x128xf32>
    %cst_11 = arith.constant dense<0.000000e+00> : vector<2x128xf32>
    %248 = tpu.matmul %247, %4, %cst_11 {dimension_numbers = #tpu.dot_dimension_numbers<[1], [0], [0], [1], [0, 0, 1, 1], [], []>} : vector<2x128xf32>, vector<128x128xf32>, vector<2x128xf32> -> vector<2x128xf32>
    %249 = arith.addf %121, %248 : vector<2x128xf32>
    %250 = math.tanh %249 : vector<2x128xf32>
    %cst_12 = arith.constant dense<0.000000e+00> : vector<2x128xf32>
    %251 = tpu.matmul %250, %4, %cst_12 {dimension_numbers = #tpu.dot_dimension_numbers<[1], [0], [0], [1], [0, 0, 1, 1], [], []>} : vector<2x128xf32>, vector<128x128xf32>, vector<2x128xf32> -> vector<2x128xf32>
    %252 = arith.addf %150, %251 : vector<2x128xf32>
    %253 = math.tanh %252 : vector<2x128xf32>
    %cst_13 = arith.constant dense<0.000000e+00> : vector<2x128xf32>
    %254 = tpu.matmul %253, %4, %cst_13 {dimension_numbers = #tpu.dot_dimension_numbers<[1], [0], [0], [1], [0, 0, 1, 1], [], []>} : vector<2x128xf32>, vector<128x128xf32>, vector<2x128xf32> -> vector<2x128xf32>
    %255 = arith.addf %179, %254 : vector<2x128xf32>
    %256 = math.tanh %255 : vector<2x128xf32>
    %cst_14 = arith.constant dense<0.000000e+00> : vector<2x128xf32>
    %257 = tpu.matmul %256, %4, %cst_14 {dimension_numbers = #tpu.dot_dimension_numbers<[1], [0], [0], [1], [0, 0, 1, 1], [], []>} : vector<2x128xf32>, vector<128x128xf32>, vector<2x128xf32> -> vector<2x128xf32>
    %258 = arith.addf %208, %257 : vector<2x128xf32>
    %259 = math.tanh %258 : vector<2x128xf32>
    %cst_15 = arith.constant dense<0.000000e+00> : vector<2x128xf32>
    %260 = tpu.matmul %259, %4, %cst_15 {dimension_numbers = #tpu.dot_dimension_numbers<[1], [0], [0], [1], [0, 0, 1, 1], [], []>} : vector<2x128xf32>, vector<128x128xf32>, vector<2x128xf32> -> vector<2x128xf32>
    %261 = arith.addf %237, %260 : vector<2x128xf32>
    %262 = math.tanh %261 : vector<2x128xf32>
    %c0_16 = arith.constant 0 : index
    %c0_17 = arith.constant 0 : index
    %263 = vector.load %arg5[%c0_16, %c0_17] : memref<128x128xbf16, #tpu.memory_space<vmem>>, vector<128x128xbf16>
    %264 = arith.extf %263 : vector<128x128xbf16> to vector<128x128xf32>
    %c0_18 = arith.constant 0 : index
    %c0_19 = arith.constant 0 : index
    %265 = vector.load %arg7[%c0_18, %c0_19] : memref<128x128xbf16, #tpu.memory_space<vmem>>, vector<128x128xbf16>
    %266 = arith.extf %265 : vector<128x128xbf16> to vector<128x128xf32>
    %cst_20 = arith.constant dense<0.000000e+00> : vector<2x128xf32>
    %267 = tpu.matmul %262, %264, %cst_20 {dimension_numbers = #tpu.dot_dimension_numbers<[1], [0], [0], [1], [0, 0, 1, 1], [], []>} : vector<2x128xf32>, vector<128x128xf32>, vector<2x128xf32> -> vector<2x128xf32>
    %c0_21 = arith.constant 0 : index
    %c0_22 = arith.constant 0 : index
    %268 = vector.load %arg6[%c0_21, %c0_22] : memref<1x128xf32, #tpu.memory_space<vmem>>, vector<1x128xf32>
    %269 = vector.broadcast %268 : vector<1x128xf32> to vector<2x128xf32>
    %270 = arith.addf %267, %269 : vector<2x128xf32>
    %271 = math.tanh %270 : vector<2x128xf32>
    %cst_23 = arith.constant dense<0.000000e+00> : vector<2x128xf32>
    %272 = tpu.matmul %271, %266, %cst_23 {dimension_numbers = #tpu.dot_dimension_numbers<[1], [0], [0], [1], [0, 0, 1, 1], [], []>} : vector<2x128xf32>, vector<128x128xf32>, vector<2x128xf32> -> vector<2x128xf32>
    %c0_24 = arith.constant 0 : index
    %c0_25 = arith.constant 0 : index
    %273 = vector.load %arg8[%c0_24, %c0_25] : memref<1x128xf32, #tpu.memory_space<vmem>>, vector<1x128xf32>
    %274 = vector.broadcast %273 : vector<1x128xf32> to vector<2x128xf32>
    %275 = arith.addf %272, %274 : vector<2x128xf32>
    %276 = math.tanh %275 : vector<2x128xf32>
    %277 = math.absf %276 : vector<2x128xf32>
    %cst_26 = arith.constant dense<0.000000e+00> : vector<2xf32>
    %278 = vector.multi_reduction <add>, %277, %cst_26 [1] : vector<2x128xf32> to vector<2xf32>
    %279 = vector.shape_cast %278 : vector<2xf32> to vector<2x1xf32>
    %280 = tpu.reciprocal %279 {approx = true} : vector<2x1xf32> -> vector<2x1xf32>
    %281 = vector.broadcast %280 : vector<2x1xf32> to vector<2x128xf32>
    %282 = arith.mulf %276, %281 : vector<2x128xf32>
    %c0_27 = arith.constant 0 : index
    %c0_28 = arith.constant 0 : index
    %283 = vector.load %arg9[%c0_27, %c0_28] : memref<2x128xf32, #tpu.memory_space<vmem>>, vector<2x128xf32>
    tpu.vector_store %arg9[%c0_27, %c0_28], %282 {strides = array<i32>} : memref<2x128xf32, #tpu.memory_space<vmem>>, vector<2x128xf32>,
    return
  }
  func.func @transform_0(%arg0: i32) -> (i32, i32, i32) {
    %c0_i32 = arith.constant 0 : i32
    %c0_i32_0 = arith.constant 0 : i32
    %c0_i32_1 = arith.constant 0 : i32
    %c0_i32_2 = arith.constant 0 : i32
    return %c0_i32, %c0_i32_0, %c0_i32_1 : i32, i32, i32
  }
  func.func @transform_1(%arg0: i32) -> (i32, i32) {
    %c0_i32 = arith.constant 0 : i32
    %c0_i32_0 = arith.constant 0 : i32
    %c0_i32_1 = arith.constant 0 : i32
    return %c0_i32, %c0_i32_0 : i32, i32
  }
  func.func @transform_2(%arg0: i32) -> (i32, i32) {
    %c0_i32 = arith.constant 0 : i32
    %c0_i32_0 = arith.constant 0 : i32
    %c0_i32_1 = arith.constant 0 : i32
    return %c0_i32, %c0_i32_0 : i32, i32
  }
  func.func @transform_3(%arg0: i32) -> (i32, i32) {
    %c0_i32 = arith.constant 0 : i32
    %c0_i32_0 = arith.constant 0 : i32
    %c0_i32_1 = arith.constant 0 : i32
    return %c0_i32, %c0_i32_0 : i32, i32
  }
  func.func @transform_4(%arg0: i32) -> (i32, i32) {
    %c0_i32 = arith.constant 0 : i32
    %c0_i32_0 = arith.constant 0 : i32
    %c0_i32_1 = arith.constant 0 : i32
    return %c0_i32, %c0_i32_0 : i32, i32
  }
  func.func @transform_5(%arg0: i32) -> (i32, i32) {
    %c0_i32 = arith.constant 0 : i32
    %c0_i32_0 = arith.constant 0 : i32
    %c0_i32_1 = arith.constant 0 : i32
    return %c0_i32, %c0_i32_0 : i32, i32
  }
  func.func @transform_6(%arg0: i32) -> (i32, i32) {
    %c0_i32 = arith.constant 0 : i32
    %c0_i32_0 = arith.constant 0 : i32
    %c0_i32_1 = arith.constant 0 : i32
    return %c0_i32, %c0_i32_0 : i32, i32
  }
  func.func @transform_7(%arg0: i32) -> (i32, i32) {
    %c0_i32 = arith.constant 0 : i32
    %c0_i32_0 = arith.constant 0 : i32
    %c0_i32_1 = arith.constant 0 : i32
    return %c0_i32, %c0_i32_0 : i32, i32
  }
  func.func @transform_8(%arg0: i32) -> (i32, i32) {
    %c0_i32 = arith.constant 0 : i32
    %c0_i32_0 = arith.constant 0 : i32
    %c0_i32_1 = arith.constant 0 : i32
    return %c0_i32, %c0_i32_0 : i32, i32
  }
}

</mosaic_0001>

<bundles_post_ra>
// kernel: tpu_custom_call.1
= control target key start
LH: loop header
LB: loop body
LE: loop exit
PB: predicated region body
PF: predicated region fallthrough
CT: control target
= control target key end

     0   :  { %13 = vsyncpa [#allocation3], 0  ;;  %s2632_s0 = inlined_call_operand.vmem [shape: f32[2,8,4], index: 0, kind: input, shape index: {}]   ;;  %s2633_s1 = inlined_call_operand.vmem [shape: bf16[4,128], index: 1, kind: input, shape index: {}]   ;;  %s2634_s2 = inlined_call_operand.hbm [shape: bf16[128,128], index: 2, kind: input, shape index: {}]   ;;  %s2635_s3 = inlined_call_operand.vmem [shape: f32[1,128], index: 3, kind: input, shape index: {}]   ;;  %s2636_s4 = inlined_call_operand.hbm [shape: bf16[128,128], index: 4, kind: input, shape index: {}]   ;;  %s2637_s5 = inlined_call_operand.vmem [shape: f32[1,128], index: 5, kind: input, shape index: {}]   ;;  %s2638_s6 = inlined_call_operand.hbm [shape: bf16[128,128], index: 6, kind: input, shape index: {}]   ;;  %s2639_s7 = inlined_call_operand.vmem [shape: f32[1,128], index: 7, kind: input, shape index: {}]   ;;  %s2640_s8 = inlined_call_operand.hbm [shape: f32[2,128], index: 8, kind: output, shape index: {}]  }
   0x1   :  { %14 = vsyncpa [#allocation6], 0 }
   0x2   :  { %15 = vsyncpa [#allocation4], 0  ;;  %s2168_s27 = smov [#allocation5]   ;;  %s2169_s29 = smov [#allocation2]  }
   0x3   :  { %s39_s28 = sshll.u32 %s2168_s27, 4  ;;  %s25_s30 = sshll.u32 %s2169_s29, 4  ;;  %s40_s28 = int_to_ptr.vmem [resolvable:$true] %s39_s28  ;;  %s2226_s30 = int_to_ptr.vmem [resolvable:$true] %s25_s30 }
   0x4   :  { %s2074_s11 = scalar_lea.hbm %s2636_s4, 1024 }
   0x5   :  { %p2075_p0 = scmp.ne.s32.totalorder %s2636_s4, %s2074_s11  ;;  %p2078_p1 = scmp.lt.u32.totalorder %s2074_s11, %s2636_s4 }
   0x7   :  { %p2080_p2 = pnand %p2078_p1, %p2075_p0 }
   0x9   :  { %2083 = shalt.err (!%p2080_p2)
}
   0xa   :  { %s2084_s16 = scalar_lea.vmem %s40_s28, 1024  ;;  %p2089_p4 = scmp.lt.s32.totalorder %s40_s28, %s40_s28 }
   0xb   :  { %p2085_p3 = scmp.ne.s32.totalorder %s40_s28, %s2084_s16  ;;  %p2090_p5 = scmp.lt.s32.totalorder %s2084_s16, %s2084_s16 }
   0xd   :  { %p2091_p6 = por %p2090_p5, %p2089_p4 }
   0xf   :  { %p2092_p7 = pnand %p2091_p6, %p2085_p3 }
  0x11   :  { %2095 = shalt.err (!%p2092_p7)
}
  0x12   :  { %s2170_s17 = smov 64   ;;  %s2171_s18 = smov 4  }
  0x13   :  { %45 = dma.hbm_to_vmem [thread:$0]  %s2636_s4, 1024, %s40_s28, [#allocation6], %s2170_s17, %s2170_s17, %s2171_s18  }
  0x14   :  { %s2096_s23 = scalar_lea.hbm %s2634_s2, 1024 }
  0x15   :  { %p2097_p8 = scmp.ne.s32.totalorder %s2634_s2, %s2096_s23  ;;  %p2100_p9 = scmp.lt.u32.totalorder %s2096_s23, %s2634_s2 }
  0x17   :  { %p2102_p10 = pnand %p2100_p9, %p2097_p8 }
  0x19   :  { %2105 = shalt.err (!%p2102_p10)
}
  0x1a   :  { %s2106_s29 = scalar_lea.vmem %s2226_s30, 1024  ;;  %p2111_p12 = scmp.lt.s32.totalorder %s2226_s30, %s2226_s30 }
  0x1b   :  { %p2107_p11 = scmp.ne.s32.totalorder %s2226_s30, %s2106_s29  ;;  %p2112_p13 = scmp.lt.s32.totalorder %s2106_s29, %s2106_s29 }
  0x1d   :  { %p2113_p0 = por %p2112_p13, %p2111_p12 }
  0x1f   :  { %p2114_p1 = pnand %p2113_p0, %p2107_p11 }
  0x21   :  { %2117 = shalt.err (!%p2114_p1)
}
  0x22   :  { %31 = dma.hbm_to_vmem [thread:$0]  %s2634_s2, 1024, %s2226_s30, [#allocation3], %s2170_s17, %s2170_s17, %s2171_s18  }
  0x23   :  { %s2172_s9 = smov [#allocation7]   ;;  %s2118_s13 = scalar_lea.hbm %s2638_s6, 1024 }
  0x24   :  { %s53_s10 = sshll.u32 %s2172_s9, 4  ;;  %p2119_p2 = scmp.ne.s32.totalorder %s2638_s6, %s2118_s13  ;;  %s54_s10 = int_to_ptr.vmem [resolvable:$true] %s53_s10 }
  0x25   :  { %p2122_p3 = scmp.lt.u32.totalorder %s2118_s13, %s2638_s6 }
  0x27   :  { %p2124_p4 = pnand %p2122_p3, %p2119_p2 }
  0x29   :  { %2127 = shalt.err (!%p2124_p4)
}
  0x2a   :  { %s2128_s20 = scalar_lea.vmem %s54_s10, 1024  ;;  %p2133_p6 = scmp.lt.s32.totalorder %s54_s10, %s54_s10 }
  0x2b   :  { %p2129_p5 = scmp.ne.s32.totalorder %s54_s10, %s2128_s20  ;;  %p2134_p7 = scmp.lt.s32.totalorder %s2128_s20, %s2128_s20 }
  0x2d   :  { %p2135_p8 = por %p2134_p7, %p2133_p6 }
  0x2f   :  { %p2136_p9 = pnand %p2135_p8, %p2129_p5 }
  0x31   :  { %2139 = shalt.err (!%p2136_p9)
}
  0x32   :  { %59 = dma.hbm_to_vmem [thread:$0]  %s2638_s6, 1024, %s54_s10, [#allocation6], %s2170_s17, %s2170_s17, %s2171_s18  }
  0x33   :  { %2162 = dma.done.wait [#allocation3], 1024  }
  0x34   :  { %2163 = vsyncadd [#allocation3], 4294966272 }
  0x35   :  { %2164 = dma.done.wait [#allocation6], 2048  }
  0x36   :  { %2165 = vsyncadd [#allocation6], 4294965248  ;;  %v2173_v0 = vmov 0.0|0.0   ;;  %vm2174_vm0 = vmmov 0   ;;  %v2175_v1 = vmov 0.0   ;;  %v2176_v2 = vmov 1  }
  0x37   :  { %1793 = vmatprep.subr.bf16.mxu0 %v2173_v0  ;;  %1475 = vmatprep.mubr.msk.f32.mxu0 %vm2174_vm0, %v2175_v1  ;;  %v2177_v3 = vmov 0   ;;  %v2284_v4 = vld [vmem:[#allocation2] sm:$0xff]   ;;  %v2289_v5 = vld [vmem:[#allocation2 + $0x8] sm:$0xff]   ;;  %v2301_v8 = vld [vmem:[#allocation2 + $0x10] sm:$0xff]   ;;  %v2178_v10 = vmov 2   ;;  %v2179_v12 = vmov 3   ;;  %v118_v16 = vlaneseq }
  0x38   :  { %2047 = vset.pattern.permute.xlu1 %v2176_v2  ;;  %2046 = vset.pattern.permute.xlu0 %v2177_v3  ;;  %v72_v6 = vld [vmem:[%s2632_s0 + $0x8] sm:$0xff]  ;;  %v71_v7 = vld [vmem:[%s2632_s0] sm:$0xff]  ;;  %v2307_v9 = vld [vmem:[#allocation2 + $0x18] sm:$0xff]   ;;  %vm133_vm1 = vcmask 1041409   ;;  %vm1130_vm2 = vcmask 1041408  }
  0x39   :  { %1817 = vmatprep.subr.bf16.mxu1 %v2173_v0  ;;  %1510 = vmatprep.mubr.msk.f32.mxu1 %vm2174_vm0, %v2175_v1  ;;  %v2313_v11 = vld [vmem:[#allocation2 + $0x20] sm:$0xff]   ;;  %v2318_v13 = vld [vmem:[#allocation2 + $0x28] sm:$0xff]   ;;  %v2324_v14 = vld [vmem:[#allocation2 + $0x30] sm:$0xff]   ;;  %v119_v17 = vshrl.u32 %v118_v16, 7 }
  0x3a   :  { %1795 = vmatpush3.bf16.msra.mxu0 %v2284_v4  ;;  %1819 = vmatpush3.bf16.msra.mxu1 %v2284_v4  ;;  %v2330_v15 = vld [vmem:[#allocation2 + $0x38] sm:$0xff]   ;;  %v73_v18 = vld [vmem:[%s2633_s1] sm:$0x3] }
  0x3b   :  { %1796 = vmatprep.subr.bf16.mxu0 %v2173_v0  ;;  %1820 = vmatprep.subr.bf16.mxu1 %v2173_v0  ;;  %v74_v19 = vunpack.c.l.bf16 %v73_v18  ;;  %v147_v20 = vsub.s32 1, %v119_v17  ;;  %v120_v21 = vsub.s32 0, %v119_v17  ;;  %v167_v26 = vsub.s32 2, %v119_v17  ;;  %v2373_v38 = vld [vmem:[%s2635_s3] ss:$0 sm:$0xff] }
  0x3c   :  { %142 = vperm.xlu1 %2047, %v72_v6   ;;  %115 = vperm.xlu0 %2046, %v72_v6   ;;  %v187_v27 = vsub.s32 3, %v119_v17 }
  0x3d   :  { %v148_v22 = vrot.slane %v74_v19, %v147_v20  ;;  %v121_v24 = vrot.slane %v74_v19, %v120_v21  ;;  %v168_v34 = vrot.slane %v74_v19, %v167_v26 }
  0x3e   :  { %1798 = vmatpush3.bf16.msra.mxu0 %v2289_v5  ;;  %1822 = vmatpush3.bf16.msra.mxu1 %v2289_v5  ;;  %v188_v35 = vrot.slane %v74_v19, %v187_v27 }
  0x3f   :  { %1799 = vmatprep.subr.bf16.mxu0 %v2173_v0  ;;  %1823 = vmatprep.subr.bf16.mxu1 %v2173_v0 }
  0x40   :  { %138 = vperm.xlu1 %2047, %v71_v7   ;;  %110 = vperm.xlu0 %2046, %v71_v7  }
  0x42   :  { %1801 = vmatpush3.bf16.msra.mxu0 %v2301_v8  ;;  %1825 = vmatpush3.bf16.msra.mxu1 %v2301_v8 }
  0x43   :  { %1802 = vmatprep.subr.bf16.mxu0 %v2173_v0  ;;  %1826 = vmatprep.subr.bf16.mxu1 %v2173_v0 }
  0x44   :  { %2049 = vset.pattern.permute.xlu1 %v2178_v10  ;;  %2048 = vset.pattern.permute.xlu0 %v2178_v10 }
  0x45   :  { %158 = vperm.xlu1 %2049, %v71_v7   ;;  %162 = vperm.xlu0 %2048, %v72_v6  }
  0x46   :  { %1804 = vmatpush3.bf16.msra.mxu0 %v2307_v9  ;;  %1828 = vmatpush3.bf16.msra.mxu1 %v2307_v9 }
  0x47   :  { %1805 = vmatprep.subr.bf16.mxu0 %v2173_v0  ;;  %1829 = vmatprep.subr.bf16.mxu1 %v2173_v0 }
  0x49   :  { %2050 = vset.pattern.permute.xlu1 %v2179_v12  ;;  %2051 = vset.pattern.permute.xlu0 %v2179_v12 }
  0x4a   :  { %1807 = vmatpush3.bf16.msra.mxu0 %v2313_v11  ;;  %182 = vperm.xlu1 %2050, %v72_v6  }
  0x4b   :  { %1808 = vmatprep.subr.bf16.mxu0 %v2173_v0  ;;  %178 = vperm.xlu0 %2051, %v71_v7  }
  0x4c   :  { %1831 = vmatpush3.bf16.msra.mxu1 %v2313_v11 }
  0x4d   :  { %1832 = vmatprep.subr.bf16.mxu1 %v2173_v0 }
  0x4e   :  { %1810 = vmatpush3.bf16.msra.mxu0 %v2318_v13 }
  0x4f   :  { %1811 = vmatprep.subr.bf16.mxu0 %v2173_v0 }
  0x50   :  { %1834 = vmatpush3.bf16.msra.mxu1 %v2318_v13 }
  0x51   :  { %1835 = vmatprep.subr.bf16.mxu1 %v2173_v0 }
  0x52   :  { %1813 = vmatpush3.bf16.msra.mxu0 %v2324_v14 }
  0x53   :  { %1814 = vmatprep.subr.bf16.mxu0 %v2173_v0 }
  0x54   :  { %1837 = vmatpush3.bf16.msra.mxu1 %v2324_v14 }
  0x55   :  { %1838 = vmatprep.subr.bf16.mxu1 %v2173_v0 }
  0x56   :  { %1816 = vmatpush3.bf16.msra.mxu0 %v2330_v15 }
  0x57   :  { %1841 = vmatprep.subr.bf16.mxu0 %v2173_v0 }
  0x58   :  { %1840 = vmatpush3.bf16.msra.mxu1 %v2330_v15 }
  0x59   :  { %1476 = vmatmul.mubr.f32.vlgmr.msra.gmra.mrb[0].mxu0 %v2175_v1  ;;  %1865 = vmatprep.subr.bf16.mxu1 %v2173_v0 }
  0x5a   :  { %1843 = vmatpush3.bf16.msra.mxu0 %v2284_v4  ;;  %1545 = vmatprep.mubr.msk.f32.mxu0 %vm2174_vm0, %v2175_v1 }
  0x5b   :  { %1844 = vmatprep.subr.bf16.mxu0 %v2173_v0 }
  0x5e   :  { %1846 = vmatpush3.bf16.msra.mxu0 %v2289_v5 }
  0x5f   :  { %1847 = vmatprep.subr.bf16.mxu0 %v2173_v0 }
  0x62   :  { %1849 = vmatpush3.bf16.msra.mxu0 %v2301_v8 }
  0x63   :  { %1850 = vmatprep.subr.bf16.mxu0 %v2173_v0 }
  0x66   :  { %1852 = vmatpush3.bf16.msra.mxu0 %v2307_v9 }
  0x67   :  { %1853 = vmatprep.subr.bf16.mxu0 %v2173_v0 }
  0x6a   :  { %1855 = vmatpush3.bf16.msra.mxu0 %v2313_v11 }
  0x6b   :  { %1856 = vmatprep.subr.bf16.mxu0 %v2173_v0 }
  0x6e   :  { %1858 = vmatpush3.bf16.msra.mxu0 %v2318_v13 }
  0x6f   :  { %1859 = vmatprep.subr.bf16.mxu0 %v2173_v0 }
  0x72   :  { %1861 = vmatpush3.bf16.msra.mxu0 %v2324_v14 }
  0x73   :  { %1862 = vmatprep.subr.bf16.mxu0 %v2173_v0 }
  0x76   :  { %1864 = vmatpush3.bf16.msra.mxu0 %v2330_v15 }
  0x77   :  { %1889 = vmatprep.subr.bf16.mxu0 %v2173_v0 }
  0xbb   :  { %v143_v23 = vpop.permute.xlu1 %142  ;;  %v116_v25 = vpop.permute.xlu0 %115 }
  0xbc   :  { %v2360_v28 = vmul.f32 %v148_v22, %v143_v23  ;;  %v2362_v29 = vmul.f32 %v121_v24, %v116_v25 }
  0xbe   :  { %v214_v36 = vrot.slane %v2362_v29, 1  ;;  %v219_v37 = vrot.slane %v2360_v28, 1  ;;  %v234_v41 = vrot.slane %v2362_v29, 2  ;;  %v239_v42 = vrot.slane %v2360_v28, 2 }
  0xbf   :  { %v139_v30 = vpop.permute.xlu1 %138  ;;  %v111_v31 = vpop.permute.xlu0 %110  ;;  %v254_v46 = vrot.slane %v2362_v29, 3  ;;  %v259_v52 = vrot.slane %v2360_v28, 3  ;;  %v274_v56 = vrot.slane %v2362_v29, 4  ;;  %v279_v19 = vrot.slane %v2360_v28, 4 }
  0xc0   :  { %v2364_v32 = vmul.f32 %v148_v22, %v139_v30  ;;  %v2366_v33 = vmul.f32 %v121_v24, %v111_v31  ;;  %v294_v24 = vrot.slane %v2362_v29, 5 }
  0xc2   :  { %v197_v39 = vrot.slane %v2366_v33, 1  ;;  %v201_v40 = vrot.slane %v2364_v32, 1  ;;  %v213_v43 = vrot.slane %v2366_v33, 2  ;;  %v218_v44 = vrot.slane %v2364_v32, 2 }
  0xc3   :  { %v233_v45 = vrot.slane %v2366_v33, 3  ;;  %v238_v51 = vrot.slane %v2364_v32, 3  ;;  %v253_v2 = vrot.slane %v2366_v33, 4 }
  0xc4   :  { %v159_v47 = vpop.permute.xlu1 %158  ;;  %v163_v48 = vpop.permute.xlu0 %162  ;;  %v198_v49 = vsel %vm133_vm1, %v2362_v29, %v197_v39  ;;  %v202_v50 = vsel %vm133_vm1, %v2360_v28, %v201_v40  ;;  %v215_v57 = vsel %vm133_vm1, %v214_v36, %v213_v43  ;;  %v220_v58 = vsel %vm133_vm1, %v219_v37, %v218_v44 }
  0xc5   :  { %v2389_v53 = vmul.f32 %v168_v34, %v159_v47  ;;  %v2391_v54 = vmul.f32 %v168_v34, %v163_v48  ;;  %v200_v55 = vadd.f32 %v2373_v38, %v198_v49  ;;  %v235_v59 = vsel %vm133_vm1, %v234_v41, %v233_v45 }
  0xc6   :  { %v240_v60 = vsel %vm133_vm1, %v239_v42, %v238_v51  ;;  %v217_v63 = vadd.f32 %v2373_v38, %v215_v57  ;;  %v237_v7 = vadd.f32 %v2373_v38, %v235_v59  ;;  %v255_v36 = vsel %vm133_vm1, %v254_v46, %v253_v2 }
  0xc7   :  { %v204_v61 = vadd.f32 %v202_v50, %v200_v55  ;;  %v205_v62 = vrot.slane %v2389_v53, 1  ;;  %v223_v3 = vrot.slane %v2389_v53, 2  ;;  %v224_v6 = vrot.slane %v2391_v54, 1 }
  0xc8   :  { %v243_v10 = vrot.slane %v2389_v53, 3  ;;  %v222_v17 = vadd.f32 %v220_v58, %v217_v63  ;;  %v244_v18 = vrot.slane %v2391_v54, 2  ;;  %v242_v27 = vadd.f32 %v240_v60, %v237_v7 }
  0xc9   :  { %v183_v12 = vpop.permute.xlu1 %182  ;;  %v206_v16 = vsel %vm133_vm1, %v2391_v54, %v205_v62  ;;  %v225_v23 = vsel %vm133_vm1, %v224_v6, %v223_v3  ;;  %v299_v37 = vrot.slane %v2360_v28, 5  ;;  %v257_v42 = vadd.f32 %v2373_v38, %v255_v36 }
  0xca   :  { %v2410_v20 = vmul.f32 %v188_v35, %v183_v12  ;;  %v179_v21 = vpop.permute.xlu0 %178  ;;  %v208_v22 = vadd.f32 %v206_v16, %v204_v61  ;;  %v227_v26 = vadd.f32 %v225_v23, %v222_v17  ;;  %v245_v30 = vsel %vm133_vm1, %v244_v18, %v243_v10 }
  0xcb   :  { %v2414_v25 = vmul.f32 %v188_v35, %v179_v21  ;;  %v247_v41 = vadd.f32 %v245_v30, %v242_v27  ;;  %v258_v43 = vrot.slane %v2364_v32, 4  ;;  %v314_v44 = vrot.slane %v2362_v29, 6 }
  0xcc   :  { %v229_v31 = vrot.slane %v2410_v20, 1  ;;  %v249_v34 = vrot.slane %v2410_v20, 2  ;;  %v319_v45 = vrot.slane %v2360_v28, 6  ;;  %v263_v49 = vrot.slane %v2389_v53, 4 }
  0xcd   :  { %v209_v39 = vrot.slane %v2414_v25, 1  ;;  %v228_v40 = vrot.slane %v2414_v25, 2  ;;  %v248_v35 = vrot.slane %v2414_v25, 3  ;;  %v260_v57 = vsel %vm133_vm1, %v259_v52, %v258_v43 }
  0xce   :  { %v262_v58 = vadd.f32 %v260_v57, %v257_v42  ;;  %v264_v59 = vrot.slane %v2391_v54, 3  ;;  %v268_v60 = vrot.slane %v2414_v25, 4  ;;  %v269_v61 = vrot.slane %v2410_v20, 3 }
  0xcf   :  { %v210_v46 = vsel %vm133_vm1, %v2410_v20, %v209_v39  ;;  %v230_v47 = vsel %vm133_vm1, %v229_v31, %v228_v40  ;;  %v250_v48 = vsel %vm133_vm1, %v249_v34, %v248_v35  ;;  %v273_v62 = vrot.slane %v2366_v33, 5 }
  0xd0   :  { %v2433_v50 = vadd.f32 %v210_v46, %v208_v22  ;;  %v2435_v51 = vadd.f32 %v230_v47, %v227_v26  ;;  %v2437_v55 = vadd.f32 %v250_v48, %v247_v41  ;;  %v278_v63 = vrot.slane %v2364_v32, 5 }
  0xd1   :  { %v283_v2 = vrot.slane %v2389_v53, 5  ;;  %v284_v3 = vrot.slane %v2391_v54, 4  ;;  %v265_v6 = vsel %vm133_vm1, %v264_v59, %v263_v49  ;;  %v270_v7 = vsel %vm133_vm1, %v269_v61, %v268_v60 }
  0xd2   :  { %v288_v52 = vrot.slane %v2414_v25, 5  ;;  %v289_v10 = vrot.slane %v2410_v20, 4  ;;  %v267_v12 = vadd.f32 %v265_v6, %v262_v58  ;;  %v275_v16 = vsel %vm133_vm1, %v274_v56, %v273_v62 }
  0xd3   :  { %v280_v17 = vsel %vm133_vm1, %v279_v19, %v278_v63  ;;  %v285_v18 = vsel %vm133_vm1, %v284_v3, %v283_v2  ;;  %v277_v21 = vadd.f32 %v2373_v38, %v275_v16  ;;  %v293_v23 = vrot.slane %v2366_v33, 6 }
  0xd4   :  { %v290_v22 = vsel %vm133_vm1, %v289_v10, %v288_v52  ;;  %v298_v26 = vrot.slane %v2364_v32, 6  ;;  %v2458_v27 = vadd.f32 %v270_v7, %v267_v12  ;;  %v303_v30 = vrot.slane %v2389_v53, 6 }
  0xd5   :  { %v304_v31 = vrot.slane %v2391_v54, 5  ;;  %v308_v56 = vrot.slane %v2414_v25, 6  ;;  %v282_v34 = vadd.f32 %v280_v17, %v277_v21  ;;  %v295_v19 = vsel %vm133_vm1, %v294_v24, %v293_v23 }
  0xd6   :  { %v300_v36 = vsel %vm133_vm1, %v299_v37, %v298_v26  ;;  %v309_v39 = vrot.slane %v2410_v20, 5  ;;  %v297_v40 = vadd.f32 %v2373_v38, %v295_v19  ;;  %v313_v35 = vrot.slane %v2366_v33, 7 }
  0xd7   :  { %v305_v41 = vsel %vm133_vm1, %v304_v31, %v303_v30  ;;  %v318_v42 = vrot.slane %v2364_v32, 7  ;;  %v287_v43 = vadd.f32 %v285_v18, %v282_v34  ;;  %v323_v47 = vrot.slane %v2389_v53, 7 }
  0xd8   :  { %v310_v46 = vsel %vm133_vm1, %v309_v39, %v308_v56  ;;  %v324_v48 = vrot.slane %v2391_v54, 6  ;;  %v302_v24 = vadd.f32 %v300_v36, %v297_v40  ;;  %v315_v37 = vsel %vm133_vm1, %v314_v44, %v313_v35 }
  0xd9   :  { %v320_v49 = vsel %vm133_vm1, %v319_v45, %v318_v42  ;;  %v328_v57 = vrot.slane %v2414_v25, 7  ;;  %v2476_v58 = vadd.f32 %v290_v22, %v287_v43  ;;  %v317_v59 = vadd.f32 %v2373_v38, %v315_v37  ;;  %v1266_v37 = vld [vmem:[#allocation7 + $0x8] sm:$0xff]  }
  0xda   :  { %v325_v60 = vsel %vm133_vm1, %v324_v48, %v323_v47  ;;  %v329_v61 = vrot.slane %v2410_v20, 6  ;;  %v307_v62 = vadd.f32 %v305_v41, %v302_v24  ;;  %v132_v45 = vrot.slane %v2362_v29, 7  ;;  %v1264_v47 = vld [vmem:[#allocation5 + $0x30] sm:$0xff]   ;;  %v1265_v48 = vld [vmem:[#allocation5 + $0x38] sm:$0xff]   ;;  %v1221_v24 = vld [vmem:[#allocation7] sm:$0xff]  }
  0xdb   :  { %v322_v63 = vadd.f32 %v320_v49, %v317_v59  ;;  %v153_v52 = vrot.slane %v2360_v28, 7  ;;  %v173_v16 = vrot.slane %v2391_v54, 7  ;;  %v193_v21 = vrot.slane %v2410_v20, 7  ;;  %v1267_v49 = vld [vmem:[#allocation7 + $0x10] sm:$0xff]  }
  0xdc   :  { %v330_v2 = vsel %vm133_vm1, %v329_v61, %v328_v57  ;;  %v2482_v3 = vadd.f32 %v310_v46, %v307_v62  ;;  %v134_v7 = vsel %vm133_vm1, %v132_v45, %v2366_v33  ;;  %v1263_v46 = vld [vmem:[#allocation5 + $0x28] sm:$0xff]   ;;  %v1269_v57 = vld [vmem:[#allocation7 + $0x20] sm:$0xff]  }
  0xdd   :  { %v327_v6 = vadd.f32 %v325_v60, %v322_v63  ;;  %v136_v10 = vadd.f32 %v2373_v38, %v134_v7  ;;  %v154_v12 = vsel %vm133_vm1, %v153_v52, %v2364_v32  ;;  %v174_v18 = vsel %vm133_vm1, %v173_v16, %v2389_v53  ;;  %v1270_v62 = vld [vmem:[#allocation7 + $0x28] sm:$0xff]   ;;  %v1271_v63 = vld [vmem:[#allocation7 + $0x30] sm:$0xff]   ;;  %v1155_v52 = vld [vmem:[%s2639_s7] ss:$0 sm:$0xff] }
  0xde   :  { %v194_v29 = vsel %vm133_vm1, %v193_v21, %v2414_v25 }
  0xdf   :  { %v2484_v44 = vadd.f32 %v330_v2, %v327_v6  ;;  %v156_v17 = vadd.f32 %v154_v12, %v136_v10  ;;  %v1272_v2 = vld [vmem:[#allocation7 + $0x38] sm:$0xff]  }
  0xe1   :  { %v176_v22 = vadd.f32 %v174_v18, %v156_v17 }
  0xe3   :  { %v196_v33 = vadd.f32 %v194_v29, %v176_v22 }
 0x12c   :  { %v399_v23 = vpop.f32.mrb[0].mxu0 }
 0x12d   :  { %v403_v28 = vadd.f32 %v399_v23, %v196_v33  ;;  %v1477_v26 = vpop.f32.mrb[1].mxu0 }
 0x12f   :  { %2052 = vtanh.f32 %v403_v28 }
 0x139   :  { %v2053_v38 = vpop.eup %2052 }
 0x13a   :  { %1511 = vmatmul.mubr.f32.vlgmr.msra.gmra.mrb[0].mxu1 %v2053_v38 }
 0x13b   :  { %1867 = vmatpush3.bf16.msra.mxu1 %v2284_v4  ;;  %1580 = vmatprep.mubr.msk.f32.mxu1 %vm2174_vm0, %v2175_v1 }
 0x13c   :  { %1868 = vmatprep.subr.bf16.mxu1 %v2173_v0 }
 0x13f   :  { %1870 = vmatpush3.bf16.msra.mxu1 %v2289_v5 }
 0x140   :  { %1871 = vmatprep.subr.bf16.mxu1 %v2173_v0 }
 0x143   :  { %1873 = vmatpush3.bf16.msra.mxu1 %v2301_v8 }
 0x144   :  { %1874 = vmatprep.subr.bf16.mxu1 %v2173_v0 }
 0x147   :  { %1876 = vmatpush3.bf16.msra.mxu1 %v2307_v9 }
 0x148   :  { %1877 = vmatprep.subr.bf16.mxu1 %v2173_v0 }
 0x14b   :  { %1879 = vmatpush3.bf16.msra.mxu1 %v2313_v11 }
 0x14c   :  { %1880 = vmatprep.subr.bf16.mxu1 %v2173_v0 }
 0x14f   :  { %1882 = vmatpush3.bf16.msra.mxu1 %v2318_v13 }
 0x150   :  { %1883 = vmatprep.subr.bf16.mxu1 %v2173_v0 }
 0x153   :  { %1885 = vmatpush3.bf16.msra.mxu1 %v2324_v14 }
 0x154   :  { %1886 = vmatprep.subr.bf16.mxu1 %v2173_v0 }
 0x157   :  { %1888 = vmatpush3.bf16.msra.mxu1 %v2330_v15 }
 0x158   :  { %1913 = vmatprep.subr.bf16.mxu1 %v2173_v0 }
 0x20d   :  { %v471_v32 = vpop.f32.mrb[0].mxu1 }
 0x20e   :  { %v475_v53 = vadd.f32 %v471_v32, %v2433_v50  ;;  %v1512_v54 = vpop.f32.mrb[1].mxu1 }
 0x210   :  { %2054 = vtanh.f32 %v475_v53 }
 0x21a   :  { %v2055_v20 = vpop.eup %2054 }
 0x21b   :  { %1546 = vmatmul.mubr.f32.vlgmr.msra.gmra.mrb[2].mxu0 %v2055_v20 }
 0x21c   :  { %1891 = vmatpush3.bf16.msra.mxu0 %v2284_v4  ;;  %1615 = vmatprep.mubr.msk.f32.mxu0 %vm2174_vm0, %v2175_v1 }
 0x21d   :  { %1892 = vmatprep.subr.bf16.mxu0 %v2173_v0 }
 0x220   :  { %1894 = vmatpush3.bf16.msra.mxu0 %v2289_v5 }
 0x221   :  { %1895 = vmatprep.subr.bf16.mxu0 %v2173_v0 }
 0x224   :  { %1897 = vmatpush3.bf16.msra.mxu0 %v2301_v8 }
 0x225   :  { %1898 = vmatprep.subr.bf16.mxu0 %v2173_v0 }
 0x228   :  { %1900 = vmatpush3.bf16.msra.mxu0 %v2307_v9 }
 0x229   :  { %1901 = vmatprep.subr.bf16.mxu0 %v2173_v0 }
 0x22c   :  { %1903 = vmatpush3.bf16.msra.mxu0 %v2313_v11 }
 0x22d   :  { %1904 = vmatprep.subr.bf16.mxu0 %v2173_v0 }
 0x230   :  { %1906 = vmatpush3.bf16.msra.mxu0 %v2318_v13 }
 0x231   :  { %1907 = vmatprep.subr.bf16.mxu0 %v2173_v0 }
 0x234   :  { %1909 = vmatpush3.bf16.msra.mxu0 %v2324_v14 }
 0x235   :  { %1910 = vmatprep.subr.bf16.mxu0 %v2173_v0 }
 0x238   :  { %1912 = vmatpush3.bf16.msra.mxu0 %v2330_v15 }
 0x239   :  { %1937 = vmatprep.subr.bf16.mxu0 %v2173_v0 }
 0x2ee   :  { %v543_v25 = vpop.f32.mrb[2].mxu0 }
 0x2ef   :  { %v547_v50 = vadd.f32 %v543_v25, %v2435_v51  ;;  %v1547_v30 = vpop.f32.mrb[3].mxu0 }
 0x2f1   :  { %2056 = vtanh.f32 %v547_v50 }
 0x2fb   :  { %v2057_v31 = vpop.eup %2056 }
 0x2fc   :  { %1581 = vmatmul.mubr.f32.vlgmr.msra.gmra.mrb[2].mxu1 %v2057_v31 }
 0x2fd   :  { %1915 = vmatpush3.bf16.msra.mxu1 %v2284_v4  ;;  %1650 = vmatprep.mubr.msk.f32.mxu1 %vm2174_vm0, %v2175_v1 }
 0x2fe   :  { %1916 = vmatprep.subr.bf16.mxu1 %v2173_v0 }
 0x301   :  { %1918 = vmatpush3.bf16.msra.mxu1 %v2289_v5 }
 0x302   :  { %1919 = vmatprep.subr.bf16.mxu1 %v2173_v0 }
 0x305   :  { %1921 = vmatpush3.bf16.msra.mxu1 %v2301_v8 }
 0x306   :  { %1922 = vmatprep.subr.bf16.mxu1 %v2173_v0 }
 0x309   :  { %1924 = vmatpush3.bf16.msra.mxu1 %v2307_v9 }
 0x30a   :  { %1925 = vmatprep.subr.bf16.mxu1 %v2173_v0 }
 0x30d   :  { %1927 = vmatpush3.bf16.msra.mxu1 %v2313_v11 }
 0x30e   :  { %1928 = vmatprep.subr.bf16.mxu1 %v2173_v0 }
 0x311   :  { %1930 = vmatpush3.bf16.msra.mxu1 %v2318_v13 }
 0x312   :  { %1931 = vmatprep.subr.bf16.mxu1 %v2173_v0 }
 0x315   :  { %1933 = vmatpush3.bf16.msra.mxu1 %v2324_v14 }
 0x316   :  { %1934 = vmatprep.subr.bf16.mxu1 %v2173_v0 }
 0x319   :  { %1936 = vmatpush3.bf16.msra.mxu1 %v2330_v15 }
 0x31a   :  { %1961 = vmatprep.subr.bf16.mxu1 %v2173_v0 }
 0x3cf   :  { %v615_v51 = vpop.f32.mrb[2].mxu1 }
 0x3d0   :  { %v619_v56 = vadd.f32 %v615_v51, %v2437_v55  ;;  %v1582_v34 = vpop.f32.mrb[3].mxu1 }
 0x3d2   :  { %2058 = vtanh.f32 %v619_v56 }
 0x3dc   :  { %v2059_v19 = vpop.eup %2058 }
 0x3dd   :  { %1616 = vmatmul.mubr.f32.vlgmr.msra.gmra.mrb[4].mxu0 %v2059_v19 }
 0x3de   :  { %1939 = vmatpush3.bf16.msra.mxu0 %v2284_v4  ;;  %1685 = vmatprep.mubr.msk.f32.mxu0 %vm2174_vm0, %v2175_v1 }
 0x3df   :  { %1940 = vmatprep.subr.bf16.mxu0 %v2173_v0 }
 0x3e2   :  { %1942 = vmatpush3.bf16.msra.mxu0 %v2289_v5 }
 0x3e3   :  { %1943 = vmatprep.subr.bf16.mxu0 %v2173_v0 }
 0x3e6   :  { %1945 = vmatpush3.bf16.msra.mxu0 %v2301_v8 }
 0x3e7   :  { %1946 = vmatprep.subr.bf16.mxu0 %v2173_v0 }
 0x3ea   :  { %1948 = vmatpush3.bf16.msra.mxu0 %v2307_v9 }
 0x3eb   :  { %1949 = vmatprep.subr.bf16.mxu0 %v2173_v0 }
 0x3ee   :  { %1951 = vmatpush3.bf16.msra.mxu0 %v2313_v11 }
 0x3ef   :  { %1952 = vmatprep.subr.bf16.mxu0 %v2173_v0 }
 0x3f2   :  { %1954 = vmatpush3.bf16.msra.mxu0 %v2318_v13 }
 0x3f3   :  { %1955 = vmatprep.subr.bf16.mxu0 %v2173_v0 }
 0x3f6   :  { %1957 = vmatpush3.bf16.msra.mxu0 %v2324_v14 }
 0x3f7   :  { %1958 = vmatprep.subr.bf16.mxu0 %v2173_v0 }
 0x3fa   :  { %1960 = vmatpush3.bf16.msra.mxu0 %v2330_v15 }
 0x3fb   :  { %1985 = vmatprep.subr.bf16.mxu0 %v2173_v0 }
 0x4b0   :  { %v687_v55 = vpop.f32.mrb[4].mxu0 }
 0x4b1   :  { %v691_v36 = vadd.f32 %v687_v55, %v2458_v27  ;;  %v1617_v39 = vpop.f32.mrb[5].mxu0  ;;  %v1262_v27 = vld [vmem:[#allocation5 + $0x20] sm:$0xff]  }
 0x4b3   :  { %2060 = vtanh.f32 %v691_v36 }
 0x4bd   :  { %v2061_v40 = vpop.eup %2060 }
 0x4be   :  { %1651 = vmatmul.mubr.f32.vlgmr.msra.gmra.mrb[4].mxu1 %v2061_v40 }
 0x4bf   :  { %1963 = vmatpush3.bf16.msra.mxu1 %v2284_v4  ;;  %1720 = vmatprep.mubr.msk.f32.mxu1 %vm2174_vm0, %v2175_v1 }
 0x4c0   :  { %1964 = vmatprep.subr.bf16.mxu1 %v2173_v0 }
 0x4c3   :  { %1966 = vmatpush3.bf16.msra.mxu1 %v2289_v5 }
 0x4c4   :  { %1967 = vmatprep.subr.bf16.mxu1 %v2173_v0 }
 0x4c7   :  { %1969 = vmatpush3.bf16.msra.mxu1 %v2301_v8 }
 0x4c8   :  { %1970 = vmatprep.subr.bf16.mxu1 %v2173_v0 }
 0x4cb   :  { %1972 = vmatpush3.bf16.msra.mxu1 %v2307_v9 }
 0x4cc   :  { %1973 = vmatprep.subr.bf16.mxu1 %v2173_v0 }
 0x4cf   :  { %1975 = vmatpush3.bf16.msra.mxu1 %v2313_v11  ;;  %v1189_v11 = vld [vmem:[#allocation5] sm:$0xff]  }
 0x4d0   :  { %1976 = vmatprep.subr.bf16.mxu1 %v2173_v0 }
 0x4d3   :  { %1978 = vmatpush3.bf16.msra.mxu1 %v2318_v13  ;;  %v1259_v13 = vld [vmem:[#allocation5 + $0x8] sm:$0xff]  }
 0x4d4   :  { %1979 = vmatprep.subr.bf16.mxu1 %v2173_v0 }
 0x4d7   :  { %1981 = vmatpush3.bf16.msra.mxu1 %v2324_v14  ;;  %v1260_v14 = vld [vmem:[#allocation5 + $0x10] sm:$0xff]  }
 0x4d8   :  { %1982 = vmatprep.subr.bf16.mxu1 %v2173_v0 }
 0x4db   :  { %1984 = vmatpush3.bf16.msra.mxu1 %v2330_v15  ;;  %v1261_v15 = vld [vmem:[#allocation5 + $0x18] sm:$0xff]  }
 0x4dc   :  { %2009 = vmatprep.subr.bf16.mxu1 %v2173_v0 }
 0x591   :  { %v759_v4 = vpop.f32.mrb[4].mxu1 }
 0x592   :  { %v763_v5 = vadd.f32 %v759_v4, %v2476_v58  ;;  %v1652_v8 = vpop.f32.mrb[5].mxu1 }
 0x594   :  { %2062 = vtanh.f32 %v763_v5 }
 0x59e   :  { %v2063_v9 = vpop.eup %2062 }
 0x59f   :  { %1686 = vmatmul.mubr.f32.vlgmr.msra.gmra.mrb[6].mxu0 %v2063_v9 }
 0x5a0   :  { %1755 = vmatprep.mubr.msk.f32.mxu0 %vm2174_vm0, %v2175_v1  ;;  %1987 = vmatpush3.bf16.msra.mxu0 %v1189_v11 }
 0x5a1   :  { %1988 = vmatprep.subr.bf16.mxu0 %v2173_v0 }
 0x5a4   :  { %1990 = vmatpush3.bf16.msra.mxu0 %v1259_v13 }
 0x5a5   :  { %1991 = vmatprep.subr.bf16.mxu0 %v2173_v0 }
 0x5a8   :  { %1993 = vmatpush3.bf16.msra.mxu0 %v1260_v14 }
 0x5a9   :  { %1994 = vmatprep.subr.bf16.mxu0 %v2173_v0 }
 0x5ac   :  { %1996 = vmatpush3.bf16.msra.mxu0 %v1261_v15 }
 0x5ad   :  { %1997 = vmatprep.subr.bf16.mxu0 %v2173_v0 }
 0x5b0   :  { %1999 = vmatpush3.bf16.msra.mxu0 %v1262_v27 }
 0x5b1   :  { %2000 = vmatprep.subr.bf16.mxu0 %v2173_v0 }
 0x5b4   :  { %2002 = vmatpush3.bf16.msra.mxu0 %v1263_v46 }
 0x5b5   :  { %2003 = vmatprep.subr.bf16.mxu0 %v2173_v0 }
 0x5b8   :  { %2005 = vmatpush3.bf16.msra.mxu0 %v1264_v47 }
 0x5b9   :  { %2006 = vmatprep.subr.bf16.mxu0 %v2173_v0 }
 0x5bc   :  { %2008 = vmatpush3.bf16.msra.mxu0 %v1265_v48 }
 0x672   :  { %v831_v41 = vpop.f32.mrb[6].mxu0 }
 0x673   :  { %v835_v35 = vadd.f32 %v831_v41, %v2482_v3  ;;  %v1687_v42 = vpop.f32.mrb[7].mxu0  ;;  %v1154_v3 = vld [vmem:[%s2637_s5] ss:$0 sm:$0xff]  ;;  %s2180_s5 = smov [#allocation8]  }
 0x674   :  { %s1143_s27 = sshll.u32 %s2180_s5, 4  ;;  %s1144_s27 = int_to_ptr.vmem [resolvable:$true] %s1143_s27 }
 0x675   :  { %2064 = vtanh.f32 %v835_v35  ;;  %s2140_s29 = scalar_lea.vmem %s1144_s27, 32  ;;  %p2145_p11 = scmp.lt.s32.totalorder %s1144_s27, %s1144_s27 }
 0x676   :  { %p2141_p10 = scmp.ne.s32.totalorder %s1144_s27, %s2140_s29  ;;  %p2146_p12 = scmp.lt.s32.totalorder %s2140_s29, %s2140_s29 }
 0x678   :  { %p2147_p13 = por %p2146_p12, %p2145_p11 }
 0x67a   :  { %p2148_p0 = pnand %p2147_p13, %p2141_p10 }
 0x67f   :  { %v2065_v43 = vpop.eup %2064 }
 0x680   :  { %1721 = vmatmul.mubr.f32.vlgmr.msra.gmra.mrb[6].mxu1 %v2065_v43 }
 0x681   :  { %1790 = vmatprep.mubr.msk.f32.mxu1 %vm2174_vm0, %v2175_v1  ;;  %2011 = vmatpush3.bf16.msra.mxu1 %v1221_v24  ;;  %v1268_v1 = vld [vmem:[#allocation7 + $0x18] sm:$0xff]  }
 0x682   :  { %2012 = vmatprep.subr.bf16.mxu1 %v2173_v0 }
 0x685   :  { %2014 = vmatpush3.bf16.msra.mxu1 %v1266_v37 }
 0x686   :  { %2015 = vmatprep.subr.bf16.mxu1 %v2173_v0 }
 0x689   :  { %2017 = vmatpush3.bf16.msra.mxu1 %v1267_v49 }
 0x68a   :  { %2018 = vmatprep.subr.bf16.mxu1 %v2173_v0 }
 0x68d   :  { %2020 = vmatpush3.bf16.msra.mxu1 %v1268_v1 }
 0x68e   :  { %2021 = vmatprep.subr.bf16.mxu1 %v2173_v0 }
 0x691   :  { %2023 = vmatpush3.bf16.msra.mxu1 %v1269_v57 }
 0x692   :  { %2024 = vmatprep.subr.bf16.mxu1 %v2173_v0 }
 0x695   :  { %2026 = vmatpush3.bf16.msra.mxu1 %v1270_v62 }
 0x696   :  { %2027 = vmatprep.subr.bf16.mxu1 %v2173_v0 }
 0x699   :  { %2029 = vmatpush3.bf16.msra.mxu1 %v1271_v63 }
 0x69a   :  { %2030 = vmatprep.subr.bf16.mxu1 %v2173_v0 }
 0x69d   :  { %2032 = vmatpush3.bf16.msra.mxu1 %v1272_v2 }
 0x753   :  { %v903_v58 = vpop.f32.mrb[6].mxu1 }
 0x754   :  { %v907_v59 = vadd.f32 %v903_v58, %v2484_v44  ;;  %v1722_v60 = vpop.f32.mrb[7].mxu1 }
 0x756   :  { %2066 = vtanh.f32 %v907_v59 }
 0x760   :  { %v2067_v61 = vpop.eup %2066 }
 0x761   :  { %1756 = vmatmul.mubr.f32.vlgmr.msra.gmra.mrb[8].mxu0 %v2067_v61 }
 0x834   :  { %v1046_v6 = vpop.f32.mrb[8].mxu0 }
 0x835   :  { %v1047_v44 = vadd.f32 %v1154_v3, %v1046_v6  ;;  %v1757_v45 = vpop.f32.mrb[9].mxu0 }
 0x837   :  { %2068 = vtanh.f32 %v1047_v44 }
 0x841   :  { %v2069_v7 = vpop.eup %2068 }
 0x842   :  { %1791 = vmatmul.mubr.f32.vlgmr.msra.gmra.mrb[8].mxu1 %v2069_v7 }
 0x915   :  { %v1124_v10 = vpop.f32.mrb[8].mxu1 }
 0x916   :  { %v1125_v12 = vadd.f32 %v1155_v52, %v1124_v10  ;;  %v1792_v16 = vpop.f32.mrb[9].mxu1 }
 0x918   :  { %2070 = vtanh.f32 %v1125_v12 }
 0x922   :  { %v2071_v0 = vpop.eup %2070 }
 0x923   :  { %v1129_v17 = vand.u32 2147483647, %v2071_v0 }
 0x925   :  { %v1131_v18 = vsel %vm1130_vm2, %v1129_v17, 0.0 }
 0x926   :  { %1132 = vadd.xlane.f32.xlu1 %v1131_v18 }
 0x9b3   :  { %v1133_v21 = vpop.xlane.xlu1 %1132 }
 0x9b4   :  { %2072 = vrcp.f32 %v1133_v21 }
 0x9be   :  { %v2073_v22 = vpop.eup %2072 }
 0x9bf   :  { %v1135_v29 = vmul.f32 %v2073_v22, %v2071_v0 }
 0x9c1   :  { %1136 = vst [vmem:[#allocation8] sm:$0x3] %v1135_v29 }
 0x9c2   :  { %2151 = shalt.err (!%p2148_p0)
}
 0x9c3   :  { %s2152_s28 = scalar_lea.hbm %s2640_s8, 32 }
 0x9c4   :  { %p2153_p1 = scmp.ne.s32.totalorder %s2640_s8, %s2152_s28  ;;  %p2156_p2 = scmp.lt.u32.totalorder %s2152_s28, %s2640_s8 }
 0x9c6   :  { %p2158_p3 = pnand %p2156_p2, %p2153_p1 }
 0x9c8   :  { %2161 = shalt.err (!%p2158_p3)
}
 0x9c9   :  { %1146 = dma.vmem_to_hbm [thread:$0]  %s1144_s27, 32, %s2640_s8, [#allocation4]  }
 0x9ca   :  { %2166 = dma.done.wait [#allocation4], 32  }
 0x9cb   :  { %2167 = vsyncadd [#allocation4], 4294967264 }
 0x9cc   :  { %1150 = vsyncpa [#allocation3], 1 }
 0x9cd   :  { %1151 = vsyncpa [#allocation6], 1 }
 0x9ce   :  { %1152 = vsyncpa [#allocation4], 1 }

</bundles_post_ra>
